<compile_context>
chip_gen: v7x
topology: tpu7x:2x2x1
jax: 0.10.0
libtpu: 0.0.40
codegen_flags: <defaults>
</compile_context>

<pallas_src>
import functools
import math

import jax
import jax.numpy as jnp
from jax import lax
from jax.experimental import pallas as pl
from jax.experimental.pallas import tpu as pltpu


# ----------------------------------------------------------------------------
# Kernel 1: fused K^T | V^T projection   kvT = [Wk @ keys^T ; Wv @ values^T]
# ----------------------------------------------------------------------------
def _kv_proj_kernel(wk_ref, wv_ref, keysT_ref, valuesT_ref, o_ref):
    e = wk_ref.shape[0]
    o_ref[0:e, :] = jnp.dot(wk_ref[...], keysT_ref[...],
                            preferred_element_type=jnp.float32).astype(o_ref.dtype)
    o_ref[e:2 * e, :] = jnp.dot(wv_ref[...], valuesT_ref[...],
                                preferred_element_type=jnp.float32).astype(o_ref.dtype)


def pallas_kv_projection(wk, wv, keysT, valuesT):
    """wk: (E, Dk), wv: (E, Dv), keysT: (Dk, Lk_pad), valuesT: (Dv, Lk_pad) -> (2E, Lk_pad)."""
    E, Dk = wk.shape
    _, Dv = wv.shape
    Lk_pad = keysT.shape[1]
    flops = 2 * E * Lk_pad * (Dk + Dv)
    bytes_accessed = 2 * (E * Dk + E * Dv + Dk * Lk_pad + Dv * Lk_pad + 2 * E * Lk_pad)
    return pl.pallas_call(
        _kv_proj_kernel,
        out_shape=jax.ShapeDtypeStruct((2 * E, Lk_pad), jnp.bfloat16),
        grid=(1,),
        in_specs=[
            pl.BlockSpec((E, Dk), lambda i: (0, 0)),
            pl.BlockSpec((E, Dv), lambda i: (0, 0)),
            pl.BlockSpec((Dk, Lk_pad), lambda i: (0, 0)),
            pl.BlockSpec((Dv, Lk_pad), lambda i: (0, 0)),
        ],
        out_specs=pl.BlockSpec((2 * E, Lk_pad), lambda i: (0, 0)),
        cost_estimate=pl.CostEstimate(
            flops=flops, transcendentals=0, bytes_accessed=bytes_accessed),
    )(wk, wv, keysT, valuesT)


# ----------------------------------------------------------------------------
# Kernel 2: fused Q projection + multi-head attention + fc_out (+ bias)
# ----------------------------------------------------------------------------
def _fused_attn_kernel(x_ref, wq_ref, kvT_ref, wout_ref, b_ref, mask_ref, o_ref,
                       *, heads, head_dim, lk_valid):
    embed = heads * head_dim
    lk_pad = kvT_ref.shape[1]

    # In-kernel Q projection (softmax scale already folded into wq_ref).  bf16 MXU
    # operands, f32 accumulation.
    q = jnp.dot(x_ref[...].astype(jnp.bfloat16), wq_ref[...],
                preferred_element_type=jnp.float32).astype(jnp.bfloat16)   # (bq, E)

    kvT = kvT_ref[...]                                                     # (2E, Lk_pad)

    ctx_parts = []
    for h in range(heads):                    # static unroll: all heads per grid step
        lo = h * head_dim
        kT_h = kvT[lo:lo + head_dim, :]                      # (Dh, Lk_pad) sublane slice
        vT_h = kvT[embed + lo:embed + lo + head_dim, :]      # (Dh, Lk_pad) sublane slice

        # scores: (bq, Dh) @ (Dh, Lk_pad) -> (bq, Lk_pad), no K relayout needed.
        s = jnp.dot(q[:, lo:lo + head_dim], kT_h,
                    preferred_element_type=jnp.float32)
        if lk_valid < lk_pad:                                # mask padded key columns
            s = s + mask_ref[...]
        # f32 softmax (keep VPU/EUP math in f32 for v5e).
        s = s - jnp.max(s, axis=-1, keepdims=True)
        p = jnp.exp(s)
        p = p * pl.reciprocal(jnp.sum(p, axis=-1, keepdims=True), approx=False)
        # ctx_h = p @ V_h  (V stored transposed -> contract last axes of both).
        ctx_parts.append(
            lax.dot_general(p.astype(jnp.bfloat16), vT_h, (((1,), (1,)), ((), ())),
                            preferred_element_type=jnp.float32))           # (bq, Dh)

    # fc_out as ONE depth-E matmul over the lane-dense concatenated context.
    ctx = jnp.concatenate(ctx_parts, axis=-1).astype(jnp.bfloat16)          # (bq, E)
    out = jnp.dot(ctx, wout_ref[...], preferred_element_type=jnp.float32)   # (bq, E)
    o_ref[...] = out + b_ref[...]


def pallas_attention(x2, wq_t, kvT, wout_t, bias, mask_bias, *, heads, head_dim,
                     lk_valid, block_q=256):
    """x2: (M, Dq) raw query rows; wq_t: (Dq, E) bf16 (scale folded); kvT: (2E, Lk_pad) bf16;
    wout_t: (E, E) bf16; bias: (1, E) f32; mask_bias: (1, Lk_pad) f32."""
    M, Dq = x2.shape
    E = heads * head_dim
    Lk_pad = kvT.shape[1]

    bq = min(block_q, M)
    grid_m = pl.cdiv(M, bq)
    M_pad = grid_m * bq
    if M_pad != M:                     # pad ragged query rows; sliced off afterwards
        x2 = jnp.pad(x2, ((0, M_pad - M), (0, 0)))

    kern = functools.partial(_fused_attn_kernel, heads=heads, head_dim=head_dim,
                             lk_valid=lk_valid)
    flops = 2 * M_pad * (Dq * E + 2 * Lk_pad * E + E * E)
    bytes_accessed = (4 * M_pad * Dq + 2 * (Dq * E + 2 * E * Lk_pad + E * E)
                      + 4 * (E + Lk_pad) + 4 * M_pad * E)

    out = pl.pallas_call(
        kern,
        out_shape=jax.ShapeDtypeStruct((M_pad, E), jnp.float32),
        grid=(grid_m,),
        in_specs=[
            pl.BlockSpec((bq, Dq), lambda i: (i, 0)),         # this tile's raw query rows
            pl.BlockSpec((Dq, E), lambda i: (0, 0)),          # Wq.T * scale   (resident)
            pl.BlockSpec((2 * E, Lk_pad), lambda i: (0, 0)),  # K^T | V^T      (resident)
            pl.BlockSpec((E, E), lambda i: (0, 0)),           # Wout.T         (resident)
            pl.BlockSpec((1, E), lambda i: (0, 0)),           # fc_out bias    (resident)
            pl.BlockSpec((1, Lk_pad), lambda i: (0, 0)),      # key-pad mask   (resident)
        ],
        out_specs=pl.BlockSpec((bq, E), lambda i: (i, 0)),
        compiler_params=pltpu.CompilerParams(dimension_semantics=("parallel",)),
        cost_estimate=pl.CostEstimate(
            flops=flops, transcendentals=M_pad * Lk_pad * heads,
            bytes_accessed=bytes_accessed),
    )(x2, wq_t, kvT, wout_t, bias, mask_bias)
    return out[:M] if M_pad != M else out


# ----------------------------------------------------------------------------
# Full forward (matches MultiHeadCrossAttention.forward with mask=None)
# ----------------------------------------------------------------------------
def cross_attention_forward(queries, keys, values, params, heads, *, block_q=256):
    N, Lq, Dq = queries.shape
    assert keys.shape[0] == 1 and values.shape[0] == 1, (
        "keys/values must have batch 1 (shared across the query batch, matching the "
        "PyTorch .repeat(N, 1, 1, 1) semantics)")
    Lk = keys.shape[1]
    assert values.shape[1] == Lk
    Dk, Dv = keys.shape[2], values.shape[2]
    E = params["Wq"].shape[0]
    Dh = E // heads
    assert Dh * heads == E

    scale = 1.0 / math.sqrt(Dh)
    bf16 = jnp.bfloat16

    # One-time parameter / layout prep (tiny, outside the kernels).
    wq_t = (params["Wq"].T * scale).astype(bf16)                 # (Dq, E), scale folded
    wout_t = params["Wout"].T.astype(bf16)                       # (E, E)
    bout = params["bout"].reshape(1, E).astype(jnp.float32)

    # Pad the key length to a lane multiple; padded columns masked to -inf.
    Lk_pad = pl.cdiv(Lk, 128) * 128
    keysT = jnp.pad(keys[0].T, ((0, 0), (0, Lk_pad - Lk))).astype(bf16)      # (Dk, Lk_pad)
    valuesT = jnp.pad(values[0].T, ((0, 0), (0, Lk_pad - Lk))).astype(bf16)  # (Dv, Lk_pad)
    mask_bias = jnp.where(jnp.arange(Lk_pad) < Lk, 0.0, -1e30).astype(
        jnp.float32).reshape(1, Lk_pad)

    # Kernel 1: K^T | V^T projection into one lane-dense bf16 buffer (no identity check
    # on keys/values; both projections always happen in a single kernel launch).
    kvT = pallas_kv_projection(params["Wk"].astype(bf16), params["Wv"].astype(bf16),
                               keysT, valuesT)

    # Kernel 2: fused Q projection + attention + fc_out over parallel query-row tiles.
    out2 = pallas_attention(queries.reshape(N * Lq, Dq), wq_t, kvT, wout_t, bout,
                            mask_bias, heads=heads, head_dim=Dh, lk_valid=Lk,
                            block_q=block_q)
    return out2.reshape(N, Lq, E)


# ----------------------------------------------------------------------------
# Pure-JAX reference (mirrors the PyTorch forward exactly, mask=None)
# ----------------------------------------------------------------------------
def reference_forward(queries, keys, values, params, heads):
    N, Lq, _ = queries.shape
    _, Lk, _ = keys.shape
    E = params["Wq"].shape[0]
    Dh = E // heads

    q = queries @ params["Wq"].T
    k = keys @ params["Wk"].T
    v = values @ params["Wv"].T
    q = q.reshape(N, Lq, heads, Dh).transpose(0, 2, 1, 3)
    k = jnp.broadcast_to(k.reshape(1, Lk, heads, Dh), (N, Lk, heads, Dh)).transpose(0, 2, 1, 3)
    v = jnp.broadcast_to(v.reshape(1, Lk, heads, Dh), (N, Lk, heads, Dh)).transpose(0, 2, 1, 3)
    energy = jnp.einsum("nhqd,nhkd->nhqk", q, k)
    attn = jax.nn.softmax(energy / math.sqrt(Dh), axis=3)
    out = jnp.einsum("nhqk,nhkd->nhqd", attn, v)
    out = out.transpose(0, 2, 1, 3).reshape(N, Lq, E)
    return out @ params["Wout"].T + params["bout"]


if __name__ == "__main__":
    # Small shapes consistent with the module (embed divisible by heads, K/V batch = 1).
    N, Lq, Lk = 2, 512, 64
    query_dim, key_value_dim = 256, 384
    embed_size, heads = 256, 8

    key = jax.random.PRNGKey(0)
    ks = jax.random.split(key, 7)

    queries = jax.random.uniform(ks[0], (N, Lq, query_dim), jnp.float32)
    keys_in = jax.random.uniform(ks[1], (1, Lk, key_value_dim), jnp.float32)
    values_in = keys_in  # module usage: values = keys

    # Deterministic "nn.Linear"-style parameters (weight: (out, in)).
    def init_w(k, out_f, in_f):
        bound = 1.0 / math.sqrt(in_f)
        return jax.random.uniform(k, (out_f, in_f), jnp.float32, -bound, bound)

    params = {
        "Wq": init_w(ks[2], embed_size, query_dim),
        "Wk": init_w(ks[3], embed_size, key_value_dim),
        "Wv": init_w(ks[4], embed_size, key_value_dim),
        "Wout": init_w(ks[5], embed_size, embed_size),
        "bout": jax.random.uniform(
            ks[6], (embed_size,), jnp.float32,
            -1.0 / math.sqrt(embed_size), 1.0 / math.sqrt(embed_size)),
    }

    out = cross_attention_forward(queries, keys_in, values_in, params, heads)
    out = jax.block_until_ready(out)

    ref = reference_forward(queries, keys_in, values_in, params, heads)
    assert out.shape == (N, Lq, embed_size)
    # bf16 MXU operands with f32 accumulation -> tolerance accordingly.
    max_err = jnp.max(jnp.abs(out - ref))
    assert jnp.allclose(out, ref, atol=2e-2, rtol=2e-2), f"mismatch vs reference: {max_err}"

    print("KERNEL_OK")
</pallas_src>

<mosaic_0001>
module attributes {stable_mosaic.version = 11 : i64} {
  func.func @_kv_proj_kernel(%arg0: i32, %arg1: memref<256x384xbf16, #tpu.memory_space<vmem>>, %arg2: memref<256x384xbf16, #tpu.memory_space<vmem>>, %arg3: memref<384x128xbf16, #tpu.memory_space<vmem>>, %arg4: memref<384x128xbf16, #tpu.memory_space<vmem>>, %arg5: memref<512x128xbf16, #tpu.memory_space<vmem>>) attributes {dimension_semantics = [#tpu.dimension_semantics<arbitrary>], iteration_bounds = array<i64: 1>, scalar_prefetch = 0 : i64, scratch_operands = 0 : i64, tpu.core_type = #tpu.core_type<tc>, window_params = [{pipeline_mode = #tpu.pipeline_mode<synchronous>, transform_indices = @transform_0, window_bounds = array<i64: 256, 384>}, {pipeline_mode = #tpu.pipeline_mode<synchronous>, transform_indices = @transform_1, window_bounds = array<i64: 256, 384>}, {pipeline_mode = #tpu.pipeline_mode<synchronous>, transform_indices = @transform_2, window_bounds = array<i64: 384, 128>}, {pipeline_mode = #tpu.pipeline_mode<synchronous>, transform_indices = @transform_3, window_bounds = array<i64: 384, 128>}, {pipeline_mode = #tpu.pipeline_mode<synchronous>, transform_indices = @transform_4, window_bounds = array<i64: 512, 128>}]} {
    %c0 = arith.constant 0 : index
    %c0_0 = arith.constant 0 : index
    %0 = vector.load %arg1[%c0, %c0_0] : memref<256x384xbf16, #tpu.memory_space<vmem>>, vector<256x384xbf16>
    %c0_1 = arith.constant 0 : index
    %c0_2 = arith.constant 0 : index
    %1 = vector.load %arg3[%c0_1, %c0_2] : memref<384x128xbf16, #tpu.memory_space<vmem>>, vector<384x128xbf16>
    %cst = arith.constant dense<0.000000e+00> : vector<256x128xf32>
    %2 = tpu.matmul %0, %1, %cst {dimension_numbers = #tpu.dot_dimension_numbers<[1], [0], [0], [1], [0, 0, 1, 1], [], []>} : vector<256x384xbf16>, vector<384x128xbf16>, vector<256x128xf32> -> vector<256x128xf32>
    %3 = arith.truncf %2 : vector<256x128xf32> to vector<256x128xbf16>
    %c0_3 = arith.constant 0 : index
    %c0_4 = arith.constant 0 : index
    %4 = vector.load %arg5[%c0_3, %c0_4] : memref<512x128xbf16, #tpu.memory_space<vmem>>, vector<256x128xbf16>
    tpu.vector_store %arg5[%c0_3, %c0_4], %3 {strides = array<i32>} : memref<512x128xbf16, #tpu.memory_space<vmem>>, vector<256x128xbf16>,
    %c0_5 = arith.constant 0 : index
    %c0_6 = arith.constant 0 : index
    %5 = vector.load %arg2[%c0_5, %c0_6] : memref<256x384xbf16, #tpu.memory_space<vmem>>, vector<256x384xbf16>
    %c0_7 = arith.constant 0 : index
    %c0_8 = arith.constant 0 : index
    %6 = vector.load %arg4[%c0_7, %c0_8] : memref<384x128xbf16, #tpu.memory_space<vmem>>, vector<384x128xbf16>
    %cst_9 = arith.constant dense<0.000000e+00> : vector<256x128xf32>
    %7 = tpu.matmul %5, %6, %cst_9 {dimension_numbers = #tpu.dot_dimension_numbers<[1], [0], [0], [1], [0, 0, 1, 1], [], []>} : vector<256x384xbf16>, vector<384x128xbf16>, vector<256x128xf32> -> vector<256x128xf32>
    %8 = arith.truncf %7 : vector<256x128xf32> to vector<256x128xbf16>
    %c256 = arith.constant 256 : index
    %c0_10 = arith.constant 0 : index
    %9 = vector.load %arg5[%c256, %c0_10] : memref<512x128xbf16, #tpu.memory_space<vmem>>, vector<256x128xbf16>
    tpu.vector_store %arg5[%c256, %c0_10], %8 {strides = array<i32>} : memref<512x128xbf16, #tpu.memory_space<vmem>>, vector<256x128xbf16>,
    return
  }
  func.func @transform_0(%arg0: i32) -> (i32, i32) {
    %c0_i32 = arith.constant 0 : i32
    %c0_i32_0 = arith.constant 0 : i32
    %c0_i32_1 = arith.constant 0 : i32
    return %c0_i32, %c0_i32_0 : i32, i32
  }
  func.func @transform_1(%arg0: i32) -> (i32, i32) {
    %c0_i32 = arith.constant 0 : i32
    %c0_i32_0 = arith.constant 0 : i32
    %c0_i32_1 = arith.constant 0 : i32
    return %c0_i32, %c0_i32_0 : i32, i32
  }
  func.func @transform_2(%arg0: i32) -> (i32, i32) {
    %c0_i32 = arith.constant 0 : i32
    %c0_i32_0 = arith.constant 0 : i32
    %c0_i32_1 = arith.constant 0 : i32
    return %c0_i32, %c0_i32_0 : i32, i32
  }
  func.func @transform_3(%arg0: i32) -> (i32, i32) {
    %c0_i32 = arith.constant 0 : i32
    %c0_i32_0 = arith.constant 0 : i32
    %c0_i32_1 = arith.constant 0 : i32
    return %c0_i32, %c0_i32_0 : i32, i32
  }
  func.func @transform_4(%arg0: i32) -> (i32, i32) {
    %c0_i32 = arith.constant 0 : i32
    %c0_i32_0 = arith.constant 0 : i32
    %c0_i32_1 = arith.constant 0 : i32
    return %c0_i32, %c0_i32_0 : i32, i32
  }
}

</mosaic_0001>

<bundles_post_ra>
// kernel: tpu_custom_call.1
= control target key start
LH: loop header
LB: loop body
LE: loop exit
PB: predicated region body
PF: predicated region fallthrough
CT: control target
= control target key end

     0   :  { %9 = vsyncpa [#allocation3], 0  ;;  %s3427_s0 = inlined_call_operand.hbm [shape: bf16[256,384], index: 0, kind: input, shape index: {}]   ;;  %s3428_s1 = inlined_call_operand.hbm [shape: bf16[256,384], index: 1, kind: input, shape index: {}]   ;;  %s3429_s2 = inlined_call_operand.hbm [shape: bf16[384,128], index: 2, kind: input, shape index: {}]   ;;  %s3430_s3 = inlined_call_operand.hbm [shape: bf16[384,128], index: 3, kind: input, shape index: {}]   ;;  %s3431_s4 = inlined_call_operand.hbm [shape: bf16[512,128], index: 4, kind: output, shape index: {}]  }
   0x1   :  { %10 = vsyncpa [#allocation6], 0 }
   0x2   :  { %11 = vsyncpa [#allocation9], 0 }
   0x3   :  { %12 = vsyncpa [#allocation4], 0  ;;  %s3215_s15 = smov [#allocation5]   ;;  %s3216_s17 = smov [#allocation2]  }
   0x4   :  { %s30_s16 = sshll.u32 %s3215_s15, 4  ;;  %s18_s18 = sshll.u32 %s3216_s17, 4  ;;  %s31_s16 = int_to_ptr.vmem [resolvable:$true] %s30_s16  ;;  %s3249_s18 = int_to_ptr.vmem [resolvable:$true] %s18_s18 }
   0x5   :  { %s3097_s21 = scalar_lea.hbm %s3428_s1, 6144 }
   0x6   :  { %p3098_p0 = scmp.ne.s32.totalorder %s3428_s1, %s3097_s21  ;;  %p3101_p1 = scmp.lt.u32.totalorder %s3097_s21, %s3428_s1 }
   0x8   :  { %p3103_p2 = pnand %p3101_p1, %p3098_p0 }
   0xa   :  { %3106 = shalt.err (!%p3103_p2)
}
   0xb   :  { %s3107_s26 = scalar_lea.vmem %s31_s16, 6144  ;;  %p3112_p4 = scmp.lt.s32.totalorder %s31_s16, %s31_s16 }
   0xc   :  { %p3108_p3 = scmp.ne.s32.totalorder %s31_s16, %s3107_s26  ;;  %p3113_p5 = scmp.lt.s32.totalorder %s3107_s26, %s3107_s26 }
   0xe   :  { %p3114_p6 = por %p3113_p5, %p3112_p4 }
  0x10   :  { %p3115_p7 = pnand %p3114_p6, %p3108_p3 }
  0x12   :  { %3118 = shalt.err (!%p3115_p7)
}
  0x13   :  { %s3217_s27 = smov 192   ;;  %s3218_s28 = smov 12  }
  0x14   :  { %36 = dma.hbm_to_vmem [thread:$0]  %s3428_s1, 6144, %s31_s16, [#allocation6], %s3217_s27, %s3217_s27, %s3218_s28  }
  0x15   :  { %s3119_s7 = scalar_lea.hbm %s3427_s0, 6144 }
  0x16   :  { %p3120_p8 = scmp.ne.s32.totalorder %s3427_s0, %s3119_s7  ;;  %p3123_p9 = scmp.lt.u32.totalorder %s3119_s7, %s3427_s0 }
  0x18   :  { %p3125_p10 = pnand %p3123_p9, %p3120_p8 }
  0x1a   :  { %3128 = shalt.err (!%p3125_p10)
}
  0x1b   :  { %s3129_s12 = scalar_lea.vmem %s3249_s18, 6144  ;;  %p3134_p12 = scmp.lt.s32.totalorder %s3249_s18, %s3249_s18 }
  0x1c   :  { %p3130_p11 = scmp.ne.s32.totalorder %s3249_s18, %s3129_s12  ;;  %p3135_p13 = scmp.lt.s32.totalorder %s3129_s12, %s3129_s12 }
  0x1e   :  { %p3136_p0 = por %p3135_p13, %p3134_p12 }
  0x20   :  { %p3137_p1 = pnand %p3136_p0, %p3130_p11 }
  0x22   :  { %3140 = shalt.err (!%p3137_p1)
}
  0x23   :  { %24 = dma.hbm_to_vmem [thread:$0]  %s3427_s0, 6144, %s3249_s18, [#allocation3], %s3217_s27, %s3217_s27, %s3218_s28  }
  0x24   :  { %s3219_s14 = smov [#allocation7]   ;;  %s3141_s19 = scalar_lea.hbm %s3429_s2, 3072 }
  0x25   :  { %s42_s15 = sshll.u32 %s3219_s14, 4  ;;  %p3142_p2 = scmp.ne.s32.totalorder %s3429_s2, %s3141_s19  ;;  %s43_s15 = int_to_ptr.vmem [resolvable:$true] %s42_s15 }
  0x26   :  { %p3145_p3 = scmp.lt.u32.totalorder %s3141_s19, %s3429_s2 }
  0x28   :  { %p3147_p4 = pnand %p3145_p3, %p3142_p2 }
  0x2a   :  { %3150 = shalt.err (!%p3147_p4)
}
  0x2b   :  { %s3151_s24 = scalar_lea.vmem %s43_s15, 3072  ;;  %p3156_p6 = scmp.lt.s32.totalorder %s43_s15, %s43_s15 }
  0x2c   :  { %p3152_p5 = scmp.ne.s32.totalorder %s43_s15, %s3151_s24  ;;  %p3157_p7 = scmp.lt.s32.totalorder %s3151_s24, %s3151_s24 }
  0x2e   :  { %p3158_p8 = por %p3157_p7, %p3156_p6 }
  0x30   :  { %p3159_p9 = pnand %p3158_p8, %p3152_p5 }
  0x32   :  { %3162 = shalt.err (!%p3159_p9)
}
  0x33   :  { %s3220_s0 = smov 64   ;;  %s3221_s18 = smov 4  }
  0x34   :  { %48 = dma.hbm_to_vmem [thread:$0]  %s3429_s2, 3072, %s43_s15, [#allocation6], %s3220_s0, %s3220_s0, %s3221_s18  }
  0x35   :  { %s3222_s27 = smov [#allocation8]   ;;  %s3163_s5 = scalar_lea.hbm %s3430_s3, 3072 }
  0x36   :  { %s54_s28 = sshll.u32 %s3222_s27, 4  ;;  %p3164_p10 = scmp.ne.s32.totalorder %s3430_s3, %s3163_s5  ;;  %s55_s28 = int_to_ptr.vmem [resolvable:$true] %s54_s28 }
  0x37   :  { %p3167_p11 = scmp.lt.u32.totalorder %s3163_s5, %s3430_s3 }
  0x39   :  { %p3169_p12 = pnand %p3167_p11, %p3164_p10 }
  0x3b   :  { %3172 = shalt.err (!%p3169_p12)
}
  0x3c   :  { %s3173_s10 = scalar_lea.vmem %s55_s28, 3072  ;;  %p3178_p0 = scmp.lt.s32.totalorder %s55_s28, %s55_s28 }
  0x3d   :  { %p3174_p13 = scmp.ne.s32.totalorder %s55_s28, %s3173_s10  ;;  %p3179_p1 = scmp.lt.s32.totalorder %s3173_s10, %s3173_s10 }
  0x3f   :  { %p3180_p2 = por %p3179_p1, %p3178_p0 }
  0x41   :  { %p3181_p3 = pnand %p3180_p2, %p3174_p13 }
  0x43   :  { %3184 = shalt.err (!%p3181_p3)
}
  0x44   :  { %60 = dma.hbm_to_vmem [thread:$0]  %s3430_s3, 3072, %s55_s28, [#allocation9], %s3220_s0, %s3220_s0, %s3221_s18  }
  0x45   :  { %3207 = dma.done.wait [#allocation3], 6144  }
  0x46   :  { %3208 = vsyncadd [#allocation3], 4294961152 }
  0x47   :  { %3209 = dma.done.wait [#allocation6], 9216  }
  0x48   :  { %3210 = vsyncadd [#allocation6], 4294958080 }
  0x49   :  { %3211 = dma.done.wait [#allocation9], 3072  }
  0x4a   :  { %3212 = vsyncadd [#allocation9], 4294964224  ;;  %v2921_v0 = vld [vmem:[#allocation7 + $0x40] sm:$0xff]   ;;  %v2924_v3 = vld [vmem:[#allocation7 + $0x48] sm:$0xff]   ;;  %s3223_s3 = smov [#allocation10]  }
  0x4b   :  { %v2922_v1 = vld [vmem:[#allocation7 + $0x80] sm:$0xff]   ;;  %2544 = vmatprep.subr.bf16.mxu0 %v2921_v0  ;;  %v2925_v4 = vld [vmem:[#allocation7 + $0x88] sm:$0xff]   ;;  %v2927_v6 = vld [vmem:[#allocation7 + $0x50] sm:$0xff]   ;;  %s2067_s12 = sshll.u32 %s3223_s3, 4  ;;  %s2068_s12 = int_to_ptr.vmem [resolvable:$true] %s2067_s12 }
  0x4c   :  { %v2923_v2 = vld [vmem:[#allocation7] sm:$0xff]   ;;  %2816 = vmatprep.subr.bf16.mxu1 %v2922_v1  ;;  %v2926_v5 = vld [vmem:[#allocation7 + $0x8] sm:$0xff]   ;;  %v2928_v7 = vld [vmem:[#allocation7 + $0x90] sm:$0xff]   ;;  %s3185_s1 = scalar_lea.vmem %s2068_s12, 4096  ;;  %p3190_p5 = scmp.lt.s32.totalorder %s2068_s12, %s2068_s12 }
  0x4d   :  { %2545 = vmatpush3.bf16.msra.mxu0 %v2923_v2  ;;  %2817 = vmatpush3.bf16.msra.mxu1 %v2922_v1  ;;  %v2929_v8 = vld [vmem:[#allocation7 + $0x10] sm:$0xff]   ;;  %v2930_v9 = vld [vmem:[#allocation7 + $0x58] sm:$0xff]   ;;  %v2933_v12 = vld [vmem:[#allocation7 + $0x60] sm:$0xff]   ;;  %p3186_p4 = scmp.ne.s32.totalorder %s2068_s12, %s3185_s1  ;;  %p3191_p6 = scmp.lt.s32.totalorder %s3185_s1, %s3185_s1 }
  0x4e   :  { %2546 = vmatprep.subr.bf16.mxu0 %v2924_v3  ;;  %2818 = vmatprep.subr.bf16.mxu1 %v2925_v4  ;;  %v2931_v10 = vld [vmem:[#allocation7 + $0x98] sm:$0xff]   ;;  %v2934_v13 = vld [vmem:[#allocation7 + $0xa0] sm:$0xff]   ;;  %v2936_v15 = vld [vmem:[#allocation7 + $0x68] sm:$0xff]  }
  0x4f   :  { %v2932_v11 = vld [vmem:[#allocation7 + $0x18] sm:$0xff]   ;;  %v2935_v14 = vld [vmem:[#allocation7 + $0x20] sm:$0xff]   ;;  %v2937_v16 = vld [vmem:[#allocation7 + $0xa8] sm:$0xff]   ;;  %p3192_p7 = por %p3191_p6, %p3190_p5 }
  0x50   :  { %v2938_v17 = vld [vmem:[#allocation7 + $0x28] sm:$0xff]   ;;  %v2939_v18 = vld [vmem:[#allocation7 + $0x70] sm:$0xff]   ;;  %v2942_v21 = vld [vmem:[#allocation7 + $0x78] sm:$0xff]  }
  0x51   :  { %2547 = vmatpush3.bf16.msra.mxu0 %v2926_v5  ;;  %2819 = vmatpush3.bf16.msra.mxu1 %v2925_v4  ;;  %v2940_v19 = vld [vmem:[#allocation7 + $0xb0] sm:$0xff]   ;;  %v2943_v22 = vld [vmem:[#allocation7 + $0xb8] sm:$0xff]   ;;  %v2945_v26 = vld [vmem:[#allocation2] ss:$12 sps:$4 sm:$0xff]   ;;  %p3193_p8 = pnand %p3192_p7, %p3186_p4 }
  0x52   :  { %2548 = vmatprep.subr.bf16.mxu0 %v2927_v6  ;;  %2820 = vmatprep.subr.bf16.mxu1 %v2928_v7  ;;  %v2941_v20 = vld [vmem:[#allocation7 + $0x30] sm:$0xff]   ;;  %v2944_v25 = vld [vmem:[#allocation7 + $0x38] sm:$0xff]   ;;  %v2950_v27 = vld [vmem:[#allocation8 + $0x40] sm:$0xff]  }
  0x53   :  { %v2947_v23 = vld [vmem:[#allocation2 + $0x4] ss:$12 sps:$4 sm:$0xff]   ;;  %v2948_v24 = vld [vmem:[#allocation2 + $0x8] ss:$12 sps:$4 sm:$0xff]   ;;  %v2949_v29 = vld [vmem:[#allocation2 + $0x20] ss:$12 sps:$4 sm:$0xff]  }
  0x54   :  { %618 = vmatprep.mubr.bf16.mxu0 %v2947_v23  ;;  %2832 = vmatprep.mubr.bf16.mxu1 %v2948_v24  ;;  %v2952_v28 = vld [vmem:[#allocation8 + $0x80] sm:$0xff]   ;;  %v2953_v31 = vld [vmem:[#allocation2 + $0x1c] ss:$12 sps:$4 sm:$0xff]   ;;  %v2965_v39 = vld [vmem:[#allocation8 + $0x50] sm:$0xff]  }
  0x55   :  { %2549 = vmatpush3.bf16.msra.mxu0 %v2929_v8  ;;  %2821 = vmatpush3.bf16.msra.mxu1 %v2928_v7  ;;  %v2951_v30 = vld [vmem:[#allocation8] sm:$0xff]   ;;  %v2958_v33 = vld [vmem:[#allocation8 + $0x48] sm:$0xff]   ;;  %v2957_v36 = vld [vmem:[#allocation2 + $0x50] ss:$12 sps:$4 sm:$0xff]  }
  0x56   :  { %2550 = vmatprep.subr.bf16.mxu0 %v2930_v9  ;;  %2822 = vmatprep.subr.bf16.mxu1 %v2931_v10  ;;  %v2955_v32 = vld [vmem:[#allocation2 + $0x38] ss:$12 sps:$4 sm:$0xff]   ;;  %v2959_v34 = vld [vmem:[#allocation8 + $0x8] sm:$0xff]   ;;  %v2960_v37 = vld [vmem:[#allocation2 + $0x34] ss:$12 sps:$4 sm:$0xff]  }
  0x57   :  { %v2956_v35 = vld [vmem:[#allocation2 + $0x18] ss:$12 sps:$4 sm:$0xff]   ;;  %v2962_v38 = vld [vmem:[#allocation2 + $0x68] ss:$12 sps:$4 sm:$0xff]   ;;  %v2963_v42 = vld [vmem:[#allocation2 + $0x30] ss:$12 sps:$4 sm:$0xff]  }
  0x58   :  { %v2966_v40 = vld [vmem:[#allocation8 + $0x10] sm:$0xff]   ;;  %v2967_v41 = vld [vmem:[#allocation8 + $0x88] sm:$0xff]   ;;  %v2973_v45 = vld [vmem:[#allocation8 + $0x58] sm:$0xff]  }
  0x59   :  { %2551 = vmatpush3.bf16.msra.mxu0 %v2932_v11  ;;  %2823 = vmatpush3.bf16.msra.mxu1 %v2931_v10  ;;  %v2964_v43 = vld [vmem:[#allocation2 + $0x80] ss:$12 sps:$4 sm:$0xff]   ;;  %v2974_v46 = vld [vmem:[#allocation8 + $0x18] sm:$0xff]   ;;  %v2982_v50 = vld [vmem:[#allocation8 + $0x90] sm:$0xff]  }
  0x5a   :  { %2552 = vmatprep.subr.bf16.mxu0 %v2933_v12  ;;  %2824 = vmatprep.subr.bf16.mxu1 %v2934_v13  ;;  %v2968_v44 = vld [vmem:[#allocation2 + $0x4c] ss:$12 sps:$4 sm:$0xff]   ;;  %v2980_v48 = vld [vmem:[#allocation8 + $0x60] sm:$0xff]   ;;  %v2971_v51 = vld [vmem:[#allocation2 + $0x48] ss:$12 sps:$4 sm:$0xff]  }
  0x5b   :  { %v2970_v47 = vld [vmem:[#allocation2 + $0x98] ss:$12 sps:$4 sm:$0xff]   ;;  %v2972_v52 = vld [vmem:[#allocation2 + $0xb0] ss:$12 sps:$4 sm:$0xff]   ;;  %v2977_v54 = vld [vmem:[#allocation2 + $0xc8] ss:$12 sps:$4 sm:$0xff]  }
  0x5c   :  { %v2981_v49 = vld [vmem:[#allocation8 + $0x20] sm:$0xff]   ;;  %v2988_v55 = vld [vmem:[#allocation8 + $0x68] sm:$0xff]   ;;  %v2995_v61 = vld [vmem:[#allocation8 + $0x70] sm:$0xff]  }
  0x5d   :  { %2553 = vmatpush3.bf16.msra.mxu0 %v2935_v14  ;;  %2825 = vmatpush3.bf16.msra.mxu1 %v2934_v13  ;;  %v2975_v53 = vld [vmem:[#allocation2 + $0x64] ss:$12 sps:$4 sm:$0xff]   ;;  %v2989_v56 = vld [vmem:[#allocation8 + $0x28] sm:$0xff]   ;;  %v2997_v63 = vld [vmem:[#allocation8 + $0x98] sm:$0xff]  }
  0x5e   :  { %2554 = vmatprep.subr.bf16.mxu0 %v2936_v15  ;;  %2826 = vmatprep.subr.bf16.mxu1 %v2937_v16  ;;  %v2978_v57 = vld [vmem:[#allocation2 + $0x60] ss:$12 sps:$4 sm:$0xff]   ;;  %v2983_v59 = vld [vmem:[#allocation2 + $0x7c] ss:$12 sps:$4 sm:$0xff]   ;;  %v2985_v60 = vld [vmem:[#allocation2 + $0xf8] ss:$12 sps:$4 sm:$0xff]  }
  0x5f   :  { %v2979_v58 = vld [vmem:[#allocation2 + $0xe0] ss:$12 sps:$4 sm:$0xff]   ;;  %v2996_v62 = vld [vmem:[#allocation8 + $0x30] sm:$0xff]   ;;  %v2986_v0 = vld [vmem:[#allocation2 + $0x78] ss:$12 sps:$4 sm:$0xff]  }
  0x60   :  { %v3003_v1 = vld [vmem:[#allocation8 + $0x78] sm:$0xff]   ;;  %v2990_v4 = vld [vmem:[#allocation2 + $0x94] ss:$12 sps:$4 sm:$0xff]   ;;  %v3024_v11 = vld [vmem:[#allocation8 + $0xa8] sm:$0xff]  }
  0x61   :  { %2555 = vmatpush3.bf16.msra.mxu0 %v2938_v17  ;;  %2827 = vmatpush3.bf16.msra.mxu1 %v2937_v16  ;;  %v3004_v2 = vld [vmem:[#allocation8 + $0x38] sm:$0xff]   ;;  %v2992_v5 = vld [vmem:[#allocation2 + $0x128] ss:$12 sps:$4 sm:$0xff]   ;;  %v3011_v6 = vld [vmem:[#allocation8 + $0xa0] sm:$0xff]  }
  0x62   :  { %2556 = vmatprep.subr.bf16.mxu0 %v2939_v18  ;;  %2828 = vmatprep.subr.bf16.mxu1 %v2940_v19  ;;  %v2987_v3 = vld [vmem:[#allocation2 + $0x110] ss:$12 sps:$4 sm:$0xff]   ;;  %v2994_v8 = vld [vmem:[#allocation2 + $0x140] ss:$12 sps:$4 sm:$0xff]   ;;  %v3000_v10 = vld [vmem:[#allocation2 + $0x158] ss:$12 sps:$4 sm:$0xff]  }
  0x63   :  { %v2993_v7 = vld [vmem:[#allocation2 + $0x90] ss:$12 sps:$4 sm:$0xff]   ;;  %v2998_v9 = vld [vmem:[#allocation2 + $0xac] ss:$12 sps:$4 sm:$0xff]   ;;  %v3001_v12 = vld [vmem:[#allocation2 + $0xa8] ss:$12 sps:$4 sm:$0xff]  }
  0x64   :  { %v3002_v13 = vld [vmem:[#allocation2 + $0x170] ss:$12 sps:$4 sm:$0xff]   ;;  %v3007_v18 = vld [vmem:[#allocation5] ss:$12 sps:$4 sm:$0xff]   ;;  %v3017_v23 = vld [vmem:[#allocation5 + $0x18] ss:$12 sps:$4 sm:$0xff]  }
  0x65   :  { %2557 = vmatpush3.bf16.msra.mxu0 %v2941_v20  ;;  %2829 = vmatpush3.bf16.msra.mxu1 %v2940_v19  ;;  %v3037_v14 = vld [vmem:[#allocation8 + $0xb0] sm:$0xff]   ;;  %v3050_v17 = vld [vmem:[#allocation8 + $0xb8] sm:$0xff]   ;;  %v3010_v19 = vld [vmem:[#allocation2 + $0xc0] ss:$12 sps:$4 sm:$0xff]  }
  0x66   :  { %2558 = vmatprep.subr.bf16.mxu0 %v2942_v21  ;;  %2830 = vmatprep.subr.bf16.mxu1 %v2943_v22  ;;  %v3005_v15 = vld [vmem:[#allocation2 + $0xc4] ss:$12 sps:$4 sm:$0xff]   ;;  %v3012_v20 = vld [vmem:[#allocation2 + $0xdc] ss:$12 sps:$4 sm:$0xff]   ;;  %v3018_v24 = vld [vmem:[#allocation2 + $0xf4] ss:$12 sps:$4 sm:$0xff]  }
  0x67   :  { %v3009_v16 = vld [vmem:[#allocation5 + $0x4] ss:$12 sps:$4 sm:$0xff]   ;;  %v3014_v21 = vld [vmem:[#allocation5 + $0x1c] ss:$12 sps:$4 sm:$0xff]  }
  0x69   :  { %2559 = vmatpush3.bf16.msra.mxu0 %v2944_v25  ;;  %2831 = vmatpush3.bf16.msra.mxu1 %v2943_v22  ;;  %v3016_v22 = vld [vmem:[#allocation2 + $0xd8] ss:$12 sps:$4 sm:$0xff]   ;;  %v3020_v25 = vld [vmem:[#allocation5 + $0x34] ss:$12 sps:$4 sm:$0xff]  }
  0x6a   :  { %2680 = vmatprep.subr.bf16.mxu1 %v2950_v27  ;;  %2864 = vmatprep.subr.bf16.mxu0 %v2952_v28  ;;  %v3023_v27 = vld [vmem:[#allocation5 + $0x30] ss:$12 sps:$4 sm:$0xff]  }
  0x6c   :  { %619 = vmatmul.mubr.bf16.vlgmr.msra.gmra.mrb[0].mxu0 %v2945_v26  ;;  %2833 = vmatmul.mubr.bf16.vlgmr.msra.gmra.mrb[0].mxu1 %v2949_v29  ;;  %v3022_v26 = vld [vmem:[#allocation2 + $0xf0] ss:$12 sps:$4 sm:$0xff]   ;;  %v3027_v29 = vld [vmem:[#allocation5 + $0x4c] ss:$12 sps:$4 sm:$0xff]  }
  0x6d   :  { %2681 = vmatpush3.bf16.msra.mxu1 %v2951_v30  ;;  %2865 = vmatpush3.bf16.msra.mxu0 %v2952_v28  ;;  %v3025_v28 = vld [vmem:[#allocation2 + $0x10c] ss:$12 sps:$4 sm:$0xff]   ;;  %v3029_v30 = vld [vmem:[#allocation2 + $0x108] ss:$12 sps:$4 sm:$0xff]  }
  0x6e   :  { %626 = vmatprep.mubr.bf16.mxu0 %v2953_v31  ;;  %2836 = vmatprep.mubr.bf16.mxu1 %v2955_v32  ;;  %v3030_v31 = vld [vmem:[#allocation5 + $0x48] ss:$12 sps:$4 sm:$0xff]   ;;  %v3031_v32 = vld [vmem:[#allocation2 + $0x124] ss:$12 sps:$4 sm:$0xff]  }
  0x6f   :  { %2682 = vmatprep.subr.bf16.mxu1 %v2958_v33  ;;  %2866 = vmatprep.subr.bf16.mxu0 %v2967_v41  ;;  %v3033_v33 = vld [vmem:[#allocation5 + $0x64] ss:$12 sps:$4 sm:$0xff]  }
  0x71   :  { %2683 = vmatpush3.bf16.msra.mxu1 %v2959_v34  ;;  %2867 = vmatpush3.bf16.msra.mxu0 %v2967_v41  ;;  %v3035_v34 = vld [vmem:[#allocation2 + $0x120] ss:$12 sps:$4 sm:$0xff]  }
  0x72   :  { %2684 = vmatprep.subr.bf16.mxu1 %v2965_v39  ;;  %2868 = vmatprep.subr.bf16.mxu0 %v2982_v50  ;;  %v3043_v39 = vld [vmem:[#allocation5 + $0x78] ss:$12 sps:$4 sm:$0xff]   ;;  %v3046_v41 = vld [vmem:[#allocation5 + $0x94] ss:$12 sps:$4 sm:$0xff]  }
  0x74   :  { %627 = vmatmul.mubr.bf16.gmra.mrb[4].mxu0 %v2956_v35  ;;  %2837 = vmatmul.mubr.bf16.gmra.mrb[4].mxu1 %v2957_v36  ;;  %v3036_v35 = vld [vmem:[#allocation5 + $0x60] ss:$12 sps:$4 sm:$0xff]   ;;  %v3038_v36 = vld [vmem:[#allocation2 + $0x13c] ss:$12 sps:$4 sm:$0xff]  }
  0x75   :  { %634 = vmatprep.mubr.bf16.mxu0 %v2960_v37  ;;  %2840 = vmatprep.mubr.bf16.mxu1 %v2962_v38  ;;  %v3040_v37 = vld [vmem:[#allocation5 + $0x7c] ss:$12 sps:$4 sm:$0xff]   ;;  %v3042_v38 = vld [vmem:[#allocation2 + $0x138] ss:$12 sps:$4 sm:$0xff]  }
  0x76   :  { %2685 = vmatpush3.bf16.msra.mxu1 %v2966_v40  ;;  %2869 = vmatpush3.bf16.msra.mxu0 %v2982_v50  ;;  %v3044_v40 = vld [vmem:[#allocation2 + $0x154] ss:$12 sps:$4 sm:$0xff]  }
  0x77   :  { %2686 = vmatprep.subr.bf16.mxu1 %v2973_v45  ;;  %2870 = vmatprep.subr.bf16.mxu0 %v2997_v63  ;;  %v3053_v45 = vld [vmem:[#allocation5 + $0xac] ss:$12 sps:$4 sm:$0xff]  }
  0x78   :  { %v3060_v50 = vld [vmem:[#allocation5 + $0xc0] ss:$12 sps:$4 sm:$0xff]  }
  0x7a   :  { %2687 = vmatpush3.bf16.msra.mxu1 %v2974_v46  ;;  %2871 = vmatpush3.bf16.msra.mxu0 %v2997_v63  ;;  %v3055_v46 = vld [vmem:[#allocation2 + $0x168] ss:$12 sps:$4 sm:$0xff]   ;;  %v3076_v63 = vld [vmem:[#allocation5 + $0xb0] ss:$12 sps:$4 sm:$0xff]  }
  0x7b   :  { %2688 = vmatprep.subr.bf16.mxu1 %v2980_v48  ;;  %2872 = vmatprep.subr.bf16.mxu0 %v3011_v6  ;;  %v3057_v48 = vld [vmem:[#allocation5 + $0xc4] ss:$12 sps:$4 sm:$0xff]  }
  0x7c   :  { %635 = vmatmul.mubr.bf16.gmra.mrb[8].mxu0 %v2963_v42  ;;  %2841 = vmatmul.mubr.bf16.gmra.mrb[8].mxu1 %v2964_v43  ;;  %v3048_v42 = vld [vmem:[#allocation2 + $0x150] ss:$12 sps:$4 sm:$0xff]  }
  0x7d   :  { %642 = vmatprep.mubr.bf16.mxu0 %v2968_v44  ;;  %2844 = vmatprep.mubr.bf16.mxu1 %v2970_v47  ;;  %v3049_v43 = vld [vmem:[#allocation5 + $0x90] ss:$12 sps:$4 sm:$0xff]   ;;  %v3051_v44 = vld [vmem:[#allocation2 + $0x16c] ss:$12 sps:$4 sm:$0xff]   ;;  %v3056_v47 = vld [vmem:[#allocation5 + $0xa8] ss:$12 sps:$4 sm:$0xff]  }
  0x7e   :  { %2689 = vmatpush3.bf16.msra.mxu1 %v2981_v49  ;;  %2873 = vmatpush3.bf16.msra.mxu0 %v3011_v6  ;;  %v3059_v49 = vld [vmem:[#allocation5 + $0x8] ss:$12 sps:$4 sm:$0xff]   ;;  %v3085_v6 = vld [vmem:[#allocation5 + $0x138] ss:$12 sps:$4 sm:$0xff]  }
  0x7f   :  { %2690 = vmatprep.subr.bf16.mxu1 %v2988_v55  ;;  %2874 = vmatprep.subr.bf16.mxu0 %v3024_v11  ;;  %v3066_v55 = vld [vmem:[#allocation5 + $0x50] ss:$12 sps:$4 sm:$0xff]  }
  0x82   :  { %2691 = vmatpush3.bf16.msra.mxu1 %v2989_v56  ;;  %2875 = vmatpush3.bf16.msra.mxu0 %v3024_v11  ;;  %v3067_v56 = vld [vmem:[#allocation5 + $0xf4] ss:$12 sps:$4 sm:$0xff]  }
  0x83   :  { %2692 = vmatprep.subr.bf16.mxu1 %v2995_v61  ;;  %2876 = vmatprep.subr.bf16.mxu0 %v3037_v14  ;;  %v3074_v61 = vld [vmem:[#allocation5 + $0x98] ss:$12 sps:$4 sm:$0xff]   ;;  %v3091_v11 = vld [vmem:[#allocation5 + $0x140] ss:$12 sps:$4 sm:$0xff]  }
  0x84   :  { %643 = vmatmul.mubr.bf16.gmra.mrb[12].mxu0 %v2971_v51  ;;  %2845 = vmatmul.mubr.bf16.gmra.mrb[12].mxu1 %v2972_v52  ;;  %v3061_v51 = vld [vmem:[#allocation5 + $0x20] ss:$12 sps:$4 sm:$0xff]   ;;  %v3062_v52 = vld [vmem:[#allocation5 + $0xdc] ss:$12 sps:$4 sm:$0xff]  }
  0x85   :  { %650 = vmatprep.mubr.bf16.mxu0 %v2975_v53  ;;  %2848 = vmatprep.mubr.bf16.mxu1 %v2977_v54  ;;  %v3064_v53 = vld [vmem:[#allocation5 + $0x38] ss:$12 sps:$4 sm:$0xff]  }
  0x86   :  { %2693 = vmatpush3.bf16.msra.mxu1 %v2996_v62  ;;  %2877 = vmatpush3.bf16.msra.mxu0 %v3037_v14  ;;  %v3065_v54 = vld [vmem:[#allocation5 + $0xd8] ss:$12 sps:$4 sm:$0xff]   ;;  %v3075_v62 = vld [vmem:[#allocation5 + $0x108] ss:$12 sps:$4 sm:$0xff]  }
  0x87   :  { %2694 = vmatprep.subr.bf16.mxu1 %v3003_v1  ;;  %2878 = vmatprep.subr.bf16.mxu0 %v3050_v17  ;;  %v3079_v1 = vld [vmem:[#allocation5 + $0xc8] ss:$12 sps:$4 sm:$0xff]  }
  0x88   :  { %v3095_v14 = vld [vmem:[#allocation5 + $0x168] ss:$12 sps:$4 sm:$0xff]  }
  0x8a   :  { %2695 = vmatpush3.bf16.msra.mxu1 %v3004_v2  ;;  %2879 = vmatpush3.bf16.msra.mxu0 %v3050_v17  ;;  %v3080_v2 = vld [vmem:[#allocation5 + $0x120] ss:$12 sps:$4 sm:$0xff]  }
  0x8c   :  { %651 = vmatmul.mubr.bf16.gmra.mrb[16].mxu0 %v2978_v57  ;;  %2849 = vmatmul.mubr.bf16.gmra.mrb[16].mxu1 %v2979_v58  ;;  %v3069_v57 = vld [vmem:[#allocation5 + $0x68] ss:$12 sps:$4 sm:$0xff]   ;;  %v3070_v58 = vld [vmem:[#allocation5 + $0xf0] ss:$12 sps:$4 sm:$0xff]  }
  0x8d   :  { %658 = vmatprep.mubr.bf16.mxu0 %v2983_v59  ;;  %2852 = vmatprep.mubr.bf16.mxu1 %v2985_v60  ;;  %v3071_v59 = vld [vmem:[#allocation5 + $0x80] ss:$12 sps:$4 sm:$0xff]  }
  0x8e   :  { %v3072_v60 = vld [vmem:[#allocation5 + $0x10c] ss:$12 sps:$4 sm:$0xff]  }
  0x94   :  { %659 = vmatmul.mubr.bf16.gmra.mrb[20].mxu0 %v2986_v0  ;;  %2853 = vmatmul.mubr.bf16.gmra.mrb[20].mxu1 %v2987_v3  ;;  %v3077_v0 = vld [vmem:[#allocation5 + $0x124] ss:$12 sps:$4 sm:$0xff]   ;;  %v3081_v3 = vld [vmem:[#allocation5 + $0xe0] ss:$12 sps:$4 sm:$0xff]  }
  0x95   :  { %666 = vmatprep.mubr.bf16.mxu0 %v2990_v4  ;;  %2856 = vmatprep.mubr.bf16.mxu1 %v2992_v5  ;;  %v3082_v4 = vld [vmem:[#allocation5 + $0x13c] ss:$12 sps:$4 sm:$0xff]   ;;  %v3084_v5 = vld [vmem:[#allocation5 + $0xf8] ss:$12 sps:$4 sm:$0xff]  }
  0x9c   :  { %667 = vmatmul.mubr.bf16.gmra.mrb[24].mxu0 %v2993_v7  ;;  %2857 = vmatmul.mubr.bf16.gmra.mrb[24].mxu1 %v2994_v8  ;;  %v3086_v7 = vld [vmem:[#allocation5 + $0x110] ss:$12 sps:$4 sm:$0xff]   ;;  %v3087_v8 = vld [vmem:[#allocation5 + $0x154] ss:$12 sps:$4 sm:$0xff]  }
  0x9d   :  { %674 = vmatprep.mubr.bf16.mxu0 %v2998_v9  ;;  %2860 = vmatprep.mubr.bf16.mxu1 %v3000_v10  ;;  %v3089_v9 = vld [vmem:[#allocation5 + $0x128] ss:$12 sps:$4 sm:$0xff]   ;;  %v3090_v10 = vld [vmem:[#allocation5 + $0x150] ss:$12 sps:$4 sm:$0xff]  }
  0xa4   :  { %675 = vmatmul.mubr.bf16.gmra.mrb[28].mxu0 %v3001_v12  ;;  %2861 = vmatmul.mubr.bf16.gmra.mrb[28].mxu1 %v3002_v13  ;;  %v3092_v12 = vld [vmem:[#allocation5 + $0x16c] ss:$12 sps:$4 sm:$0xff]  }
  0xa5   :  { %682 = vmatprep.mubr.bf16.mxu0 %v3005_v15  ;;  %1612 = vmatprep.mubr.bf16.mxu1 %v3009_v16  ;;  %v3094_v13 = vld [vmem:[#allocation5 + $0x158] ss:$12 sps:$4 sm:$0xff]   ;;  %v3096_v15 = vld [vmem:[#allocation5 + $0x170] ss:$12 sps:$4 sm:$0xff]  }
  0xac   :  { %683 = vmatmul.mubr.bf16.gmra.mrb[32].mxu0 %v3010_v19  ;;  %1613 = vmatmul.mubr.bf16.vlgmr.msra.gmra.mrb[32].mxu1 %v3007_v18 }
  0xad   :  { %690 = vmatprep.mubr.bf16.mxu0 %v3012_v20  ;;  %1620 = vmatprep.mubr.bf16.mxu1 %v3014_v21 }
  0xb4   :  { %691 = vmatmul.mubr.bf16.gmra.mrb[36].mxu0 %v3016_v22  ;;  %1621 = vmatmul.mubr.bf16.gmra.mrb[36].mxu1 %v3017_v23 }
  0xb5   :  { %698 = vmatprep.mubr.bf16.mxu0 %v3018_v24  ;;  %1628 = vmatprep.mubr.bf16.mxu1 %v3020_v25 }
  0xbc   :  { %699 = vmatmul.mubr.bf16.gmra.mrb[40].mxu0 %v3022_v26  ;;  %1629 = vmatmul.mubr.bf16.gmra.mrb[40].mxu1 %v3023_v27 }
  0xbd   :  { %706 = vmatprep.mubr.bf16.mxu0 %v3025_v28  ;;  %1636 = vmatprep.mubr.bf16.mxu1 %v3027_v29 }
  0xc4   :  { %707 = vmatmul.mubr.bf16.gmra.mrb[44].mxu0 %v3029_v30  ;;  %1637 = vmatmul.mubr.bf16.gmra.mrb[44].mxu1 %v3030_v31 }
  0xc5   :  { %714 = vmatprep.mubr.bf16.mxu0 %v3031_v32  ;;  %1644 = vmatprep.mubr.bf16.mxu1 %v3033_v33 }
  0xcc   :  { %715 = vmatmul.mubr.bf16.gmra.mrb[48].mxu0 %v3035_v34  ;;  %1645 = vmatmul.mubr.bf16.gmra.mrb[48].mxu1 %v3036_v35 }
  0xcd   :  { %722 = vmatprep.mubr.bf16.mxu0 %v3038_v36  ;;  %1652 = vmatprep.mubr.bf16.mxu1 %v3040_v37 }
  0xd4   :  { %723 = vmatmul.mubr.bf16.gmra.mrb[52].mxu0 %v3042_v38  ;;  %1653 = vmatmul.mubr.bf16.gmra.mrb[52].mxu1 %v3043_v39 }
  0xd5   :  { %730 = vmatprep.mubr.bf16.mxu0 %v3044_v40  ;;  %1660 = vmatprep.mubr.bf16.mxu1 %v3046_v41 }
  0xdc   :  { %731 = vmatmul.mubr.bf16.gmra.mrb[56].mxu0 %v3048_v42  ;;  %1661 = vmatmul.mubr.bf16.gmra.mrb[56].mxu1 %v3049_v43 }
  0xdd   :  { %738 = vmatprep.mubr.bf16.mxu0 %v3051_v44  ;;  %1668 = vmatprep.mubr.bf16.mxu1 %v3053_v45 }
  0xe4   :  { %739 = vmatmul.mubr.bf16.gmra.mrb[60].mxu0 %v3055_v46  ;;  %1669 = vmatmul.mubr.bf16.gmra.mrb[60].mxu1 %v3056_v47 }
  0xe5   :  { %1676 = vmatprep.mubr.bf16.mxu1 %v3057_v48  ;;  %2880 = vmatprep.mubr.bf16.mxu0 %v3059_v49 }
  0xec   :  { %1677 = vmatmul.mubr.bf16.gmra.mrb[64].mxu1 %v3060_v50  ;;  %2881 = vmatmul.mubr.bf16.vlgmr.msra.gmra.mrb[64].mxu0 %v3061_v51 }
  0xed   :  { %1684 = vmatprep.mubr.bf16.mxu1 %v3062_v52  ;;  %2884 = vmatprep.mubr.bf16.mxu0 %v3064_v53 }
  0xf4   :  { %1685 = vmatmul.mubr.bf16.gmra.mrb[68].mxu1 %v3065_v54  ;;  %2885 = vmatmul.mubr.bf16.gmra.mrb[68].mxu0 %v3066_v55 }
  0xf5   :  { %1692 = vmatprep.mubr.bf16.mxu1 %v3067_v56  ;;  %2888 = vmatprep.mubr.bf16.mxu0 %v3069_v57 }
  0xfc   :  { %1693 = vmatmul.mubr.bf16.gmra.mrb[72].mxu1 %v3070_v58  ;;  %2889 = vmatmul.mubr.bf16.gmra.mrb[72].mxu0 %v3071_v59 }
  0xfd   :  { %1700 = vmatprep.mubr.bf16.mxu1 %v3072_v60  ;;  %2892 = vmatprep.mubr.bf16.mxu0 %v3074_v61 }
 0x104   :  { %1701 = vmatmul.mubr.bf16.gmra.mrb[76].mxu1 %v3075_v62  ;;  %2893 = vmatmul.mubr.bf16.gmra.mrb[76].mxu0 %v3076_v63 }
 0x105   :  { %1708 = vmatprep.mubr.bf16.mxu1 %v3077_v0  ;;  %2896 = vmatprep.mubr.bf16.mxu0 %v3079_v1 }
 0x10c   :  { %1709 = vmatmul.mubr.bf16.gmra.mrb[80].mxu1 %v3080_v2  ;;  %2897 = vmatmul.mubr.bf16.gmra.mrb[80].mxu0 %v3081_v3 }
 0x10d   :  { %1716 = vmatprep.mubr.bf16.mxu1 %v3082_v4  ;;  %2900 = vmatprep.mubr.bf16.mxu0 %v3084_v5 }
 0x114   :  { %1717 = vmatmul.mubr.bf16.gmra.mrb[84].mxu1 %v3085_v6  ;;  %2901 = vmatmul.mubr.bf16.gmra.mrb[84].mxu0 %v3086_v7 }
 0x115   :  { %1724 = vmatprep.mubr.bf16.mxu1 %v3087_v8  ;;  %2904 = vmatprep.mubr.bf16.mxu0 %v3089_v9 }
 0x11c   :  { %1725 = vmatmul.mubr.bf16.gmra.mrb[88].mxu1 %v3090_v10  ;;  %2905 = vmatmul.mubr.bf16.gmra.mrb[88].mxu0 %v3091_v11 }
 0x11d   :  { %1732 = vmatprep.mubr.bf16.mxu1 %v3092_v12  ;;  %2908 = vmatprep.mubr.bf16.mxu0 %v3094_v13 }
 0x124   :  { %1733 = vmatmul.mubr.bf16.gmra.mrb[92].mxu1 %v3095_v14  ;;  %2909 = vmatmul.mubr.bf16.gmra.mrb[92].mxu0 %v3096_v15 }
 0x13f   :  { %v2560_v16 = vpop.f32.mrb[0].mxu0  ;;  %v2834_v17 = vpop.f32.mrb[0].mxu1 }
 0x140   :  { %v2561_v18 = vpop.f32.mrb[1].mxu0  ;;  %v781_v19 = vpop.f32.mrb[1].mxu1 }
 0x141   :  { %v2562_v20 = vadd.f32 %v2561_v18, %v2560_v16  ;;  %v2563_v21 = vpop.f32.mrb[2].mxu0  ;;  %v2835_v22 = vpop.f32.mrb[2].mxu1 }
 0x142   :  { %v2564_v23 = vpop.f32.mrb[3].mxu0  ;;  %v784_v24 = vpop.f32.mrb[3].mxu1 }
 0x143   :  { %v782_v25 = vadd.f32 %v2562_v20, %v781_v19  ;;  %v2565_v26 = vadd.f32 %v2564_v23, %v2563_v21 }
 0x145   :  { %v785_v27 = vadd.f32 %v2565_v26, %v784_v24 }
 0x147   :  { %v2356_v28 = vpack.c.bf16 %v785_v27, %v782_v25  ;;  %v2566_v29 = vpop.f32.mrb[4].mxu0  ;;  %v2838_v30 = vpop.f32.mrb[4].mxu1 }
 0x148   :  { %v2567_v31 = vpop.f32.mrb[5].mxu0  ;;  %v797_v32 = vpop.f32.mrb[5].mxu1 }
 0x149   :  { %2357 = vst [vmem:[#allocation10] sm:$0xff] %v2356_v28   ;;  %v2568_v33 = vadd.f32 %v2567_v31, %v2566_v29  ;;  %v2569_v34 = vpop.f32.mrb[6].mxu0  ;;  %v2839_v35 = vpop.f32.mrb[6].mxu1 }
 0x14a   :  { %v2570_v36 = vpop.f32.mrb[7].mxu0  ;;  %v800_v37 = vpop.f32.mrb[7].mxu1 }
 0x14b   :  { %v790_v38 = vadd.f32 %v2834_v17, %v2568_v33  ;;  %v2571_v39 = vadd.f32 %v2570_v36, %v2569_v34 }
 0x14d   :  { %v793_v40 = vadd.f32 %v2835_v22, %v2571_v39 }
 0x14f   :  { %v2361_v41 = vpack.c.bf16 %v793_v40, %v790_v38  ;;  %v2572_v42 = vpop.f32.mrb[8].mxu0  ;;  %v2842_v43 = vpop.f32.mrb[8].mxu1 }
 0x150   :  { %v2573_v44 = vpop.f32.mrb[9].mxu0  ;;  %v813_v45 = vpop.f32.mrb[9].mxu1 }
 0x151   :  { %2513 = vst [vmem:[#allocation10 + $0x8] sm:$0xff] %v2361_v41   ;;  %v2574_v46 = vadd.f32 %v2573_v44, %v2572_v42  ;;  %v2575_v47 = vpop.f32.mrb[10].mxu0  ;;  %v2843_v48 = vpop.f32.mrb[10].mxu1 }
 0x152   :  { %v2576_v49 = vpop.f32.mrb[11].mxu0  ;;  %v816_v50 = vpop.f32.mrb[11].mxu1 }
 0x153   :  { %v798_v51 = vadd.f32 %v2574_v46, %v797_v32  ;;  %v2577_v52 = vadd.f32 %v2576_v49, %v2575_v47 }
 0x155   :  { %v801_v53 = vadd.f32 %v2577_v52, %v800_v37 }
 0x157   :  { %v2366_v54 = vpack.c.bf16 %v801_v53, %v798_v51  ;;  %v2578_v55 = vpop.f32.mrb[12].mxu0  ;;  %v3310_v56 = vpop.f32.mrb[12].mxu1 }
 0x158   :  { %v2579_v57 = vpop.f32.mrb[13].mxu0  ;;  %v829_v58 = vpop.f32.mrb[13].mxu1 }
 0x159   :  { %2514 = vst [vmem:[#allocation10 + $0x10] sm:$0xff] %v2366_v54   ;;  %v2580_v59 = vadd.f32 %v2579_v57, %v2578_v55  ;;  %v2581_v60 = vpop.f32.mrb[14].mxu0  ;;  %v2847_v61 = vpop.f32.mrb[14].mxu1 }
 0x15a   :  { %v2582_v62 = vpop.f32.mrb[15].mxu0  ;;  %v832_v63 = vpop.f32.mrb[15].mxu1 }
 0x15b   :  { %v806_v0 = vadd.f32 %v2838_v30, %v2580_v59  ;;  %v2583_v1 = vadd.f32 %v2582_v62, %v2581_v60 }
 0x15d   :  { %v809_v2 = vadd.f32 %v2839_v35, %v2583_v1 }
 0x15f   :  { %v2371_v3 = vpack.c.bf16 %v809_v2, %v806_v0  ;;  %v2584_v4 = vpop.f32.mrb[16].mxu0  ;;  %v3312_v5 = vpop.f32.mrb[16].mxu1 }
 0x160   :  { %v2585_v6 = vpop.f32.mrb[17].mxu0  ;;  %v3314_v7 = vpop.f32.mrb[17].mxu1 }
 0x161   :  { %2515 = vst [vmem:[#allocation10 + $0x18] sm:$0xff] %v2371_v3   ;;  %v2586_v8 = vadd.f32 %v2585_v6, %v2584_v4  ;;  %v2587_v9 = vpop.f32.mrb[18].mxu0  ;;  %v3316_v10 = vpop.f32.mrb[18].mxu1 }
 0x162   :  { %v2588_v11 = vpop.f32.mrb[19].mxu0  ;;  %v848_v12 = vpop.f32.mrb[19].mxu1 }
 0x163   :  { %v814_v13 = vadd.f32 %v2586_v8, %v813_v45  ;;  %v2589_v14 = vadd.f32 %v2588_v11, %v2587_v9 }
 0x165   :  { %v817_v15 = vadd.f32 %v2589_v14, %v816_v50 }
 0x167   :  { %v2376_v16 = vpack.c.bf16 %v817_v15, %v814_v13  ;;  %v2590_v17 = vpop.f32.mrb[20].mxu0  ;;  %v3318_v18 = vpop.f32.mrb[20].mxu1 }
 0x168   :  { %v2591_v19 = vpop.f32.mrb[21].mxu0  ;;  %v3320_v20 = vpop.f32.mrb[21].mxu1 }
 0x169   :  { %2516 = vst [vmem:[#allocation10 + $0x20] sm:$0xff] %v2376_v16   ;;  %v2592_v21 = vadd.f32 %v2591_v19, %v2590_v17  ;;  %v2593_v22 = vpop.f32.mrb[22].mxu0  ;;  %v3322_v23 = vpop.f32.mrb[22].mxu1 }
 0x16a   :  { %v2594_v24 = vpop.f32.mrb[23].mxu0  ;;  %v3324_v25 = vpop.f32.mrb[23].mxu1 }
 0x16b   :  { %v822_v26 = vadd.f32 %v2842_v43, %v2592_v21  ;;  %v2595_v27 = vadd.f32 %v2594_v24, %v2593_v22 }
 0x16d   :  { %v825_v28 = vadd.f32 %v2843_v48, %v2595_v27 }
 0x16f   :  { %v2381_v29 = vpack.c.bf16 %v825_v28, %v822_v26  ;;  %v2596_v30 = vpop.f32.mrb[24].mxu0  ;;  %v3326_v31 = vpop.f32.mrb[24].mxu1 }
 0x170   :  { %v2597_v32 = vpop.f32.mrb[25].mxu0  ;;  %v3328_v33 = vpop.f32.mrb[25].mxu1 }
 0x171   :  { %2517 = vst [vmem:[#allocation10 + $0x28] sm:$0xff] %v2381_v29   ;;  %v2598_v34 = vadd.f32 %v2597_v32, %v2596_v30  ;;  %v2599_v35 = vpop.f32.mrb[26].mxu0  ;;  %v3330_v36 = vpop.f32.mrb[26].mxu1 }
 0x172   :  { %v2600_v37 = vpop.f32.mrb[27].mxu0  ;;  %v3332_v38 = vpop.f32.mrb[27].mxu1 }
 0x173   :  { %v830_v39 = vadd.f32 %v2598_v34, %v829_v58  ;;  %v2601_v40 = vadd.f32 %v2600_v37, %v2599_v35 }
 0x175   :  { %v833_v41 = vadd.f32 %v2601_v40, %v832_v63 }
 0x177   :  { %v2386_v42 = vpack.c.bf16 %v833_v41, %v830_v39  ;;  %v2602_v43 = vpop.f32.mrb[28].mxu0  ;;  %v3334_v44 = vpop.f32.mrb[28].mxu1 }
 0x178   :  { %v2603_v45 = vpop.f32.mrb[29].mxu0  ;;  %v3336_v46 = vpop.f32.mrb[29].mxu1 }
 0x179   :  { %2518 = vst [vmem:[#allocation10 + $0x30] sm:$0xff] %v2386_v42   ;;  %v2604_v47 = vadd.f32 %v2603_v45, %v2602_v43  ;;  %v2605_v48 = vpop.f32.mrb[30].mxu0  ;;  %v3338_v49 = vpop.f32.mrb[30].mxu1 }
 0x17a   :  { %v2606_v50 = vpop.f32.mrb[31].mxu0  ;;  %v3340_v51 = vpop.f32.mrb[31].mxu1 }
 0x17b   :  { %v838_v52 = vadd.f32 %v3310_v56, %v2604_v47  ;;  %v2607_v53 = vadd.f32 %v2606_v50, %v2605_v48 }
 0x17d   :  { %v841_v54 = vadd.f32 %v2847_v61, %v2607_v53 }
 0x17f   :  { %v2391_v55 = vpack.c.bf16 %v841_v54, %v838_v52  ;;  %v2608_v57 = vpop.f32.mrb[32].mxu0  ;;  %v2696_v58 = vpop.f32.mrb[32].mxu1 }
 0x180   :  { %v2609_v59 = vpop.f32.mrb[33].mxu0  ;;  %v2697_v60 = vpop.f32.mrb[33].mxu1 }
 0x181   :  { %2519 = vst [vmem:[#allocation10 + $0x38] sm:$0xff] %v2391_v55   ;;  %v2610_v62 = vadd.f32 %v2609_v59, %v2608_v57  ;;  %v3343_v63 = vadd.f32 %v2697_v60, %v2696_v58  ;;  %v2611_v0 = vpop.f32.mrb[34].mxu0  ;;  %v2699_v1 = vpop.f32.mrb[34].mxu1 }
 0x182   :  { %v2612_v2 = vpop.f32.mrb[35].mxu0  ;;  %v2700_v3 = vpop.f32.mrb[35].mxu1 }
 0x183   :  { %v846_v4 = vadd.f32 %v2610_v62, %v3314_v7  ;;  %v2613_v6 = vadd.f32 %v2612_v2, %v2611_v0  ;;  %v3346_v8 = vadd.f32 %v2700_v3, %v2699_v1 }
 0x185   :  { %v849_v56 = vadd.f32 %v2613_v6, %v848_v12 }
 0x187   :  { %v2396_v61 = vpack.c.bf16 %v849_v56, %v846_v4  ;;  %v2614_v9 = vpop.f32.mrb[36].mxu0  ;;  %v2702_v11 = vpop.f32.mrb[36].mxu1 }
 0x188   :  { %v2615_v13 = vpop.f32.mrb[37].mxu0  ;;  %v2703_v14 = vpop.f32.mrb[37].mxu1 }
 0x189   :  { %2520 = vst [vmem:[#allocation10 + $0x40] sm:$0xff] %v2396_v61   ;;  %v2616_v15 = vadd.f32 %v2615_v13, %v2614_v9  ;;  %v3348_v16 = vadd.f32 %v2703_v14, %v2702_v11  ;;  %v2617_v17 = vpop.f32.mrb[38].mxu0  ;;  %v2705_v19 = vpop.f32.mrb[38].mxu1 }
 0x18a   :  { %v2618_v21 = vpop.f32.mrb[39].mxu0  ;;  %v2706_v22 = vpop.f32.mrb[39].mxu1 }
 0x18b   :  { %v854_v24 = vadd.f32 %v3312_v5, %v2616_v15  ;;  %v2619_v7 = vadd.f32 %v2618_v21, %v2617_v17  ;;  %v3351_v26 = vadd.f32 %v2706_v22, %v2705_v19 }
 0x18d   :  { %v857_v12 = vadd.f32 %v3316_v10, %v2619_v7 }
 0x18f   :  { %v2401_v27 = vpack.c.bf16 %v857_v12, %v854_v24  ;;  %v2620_v28 = vpop.f32.mrb[40].mxu0  ;;  %v2708_v29 = vpop.f32.mrb[40].mxu1 }
 0x190   :  { %v2621_v30 = vpop.f32.mrb[41].mxu0  ;;  %v2709_v32 = vpop.f32.mrb[41].mxu1 }
 0x191   :  { %2521 = vst [vmem:[#allocation10 + $0x48] sm:$0xff] %v2401_v27   ;;  %v2622_v34 = vadd.f32 %v2621_v30, %v2620_v28  ;;  %v3354_v35 = vadd.f32 %v2709_v32, %v2708_v29  ;;  %v2623_v37 = vpop.f32.mrb[42].mxu0  ;;  %v2711_v39 = vpop.f32.mrb[42].mxu1 }
 0x192   :  { %v2624_v40 = vpop.f32.mrb[43].mxu0  ;;  %v2712_v41 = vpop.f32.mrb[43].mxu1 }
 0x193   :  { %v862_v5 = vadd.f32 %v2622_v34, %v3320_v20  ;;  %v2625_v42 = vadd.f32 %v2624_v40, %v2623_v37  ;;  %v3357_v43 = vadd.f32 %v2712_v41, %v2711_v39 }
 0x195   :  { %v865_v10 = vadd.f32 %v2625_v42, %v3324_v25 }
 0x197   :  { %v2406_v45 = vpack.c.bf16 %v865_v10, %v862_v5  ;;  %v2626_v47 = vpop.f32.mrb[44].mxu0  ;;  %v2714_v48 = vpop.f32.mrb[44].mxu1 }
 0x198   :  { %v2627_v50 = vpop.f32.mrb[45].mxu0  ;;  %v2715_v52 = vpop.f32.mrb[45].mxu1 }
 0x199   :  { %2522 = vst [vmem:[#allocation10 + $0x50] sm:$0xff] %v2406_v45   ;;  %v2628_v53 = vadd.f32 %v2627_v50, %v2626_v47  ;;  %v3360_v54 = vadd.f32 %v2715_v52, %v2714_v48  ;;  %v2629_v55 = vpop.f32.mrb[46].mxu0  ;;  %v2717_v57 = vpop.f32.mrb[46].mxu1 }
 0x19a   :  { %v2630_v58 = vpop.f32.mrb[47].mxu0  ;;  %v2718_v59 = vpop.f32.mrb[47].mxu1 }
 0x19b   :  { %v870_v20 = vadd.f32 %v3318_v18, %v2628_v53  ;;  %v2631_v60 = vadd.f32 %v2630_v58, %v2629_v55  ;;  %v3363_v62 = vadd.f32 %v2718_v59, %v2717_v57 }
 0x19d   :  { %v873_v25 = vadd.f32 %v3322_v23, %v2631_v60 }
 0x19f   :  { %v2411_v0 = vpack.c.bf16 %v873_v25, %v870_v20  ;;  %v2632_v1 = vpop.f32.mrb[48].mxu0  ;;  %v2720_v2 = vpop.f32.mrb[48].mxu1 }
 0x1a0   :  { %v2633_v3 = vpop.f32.mrb[49].mxu0  ;;  %v2721_v4 = vpop.f32.mrb[49].mxu1 }
 0x1a1   :  { %2523 = vst [vmem:[#allocation10 + $0x58] sm:$0xff] %v2411_v0   ;;  %v2634_v6 = vadd.f32 %v2633_v3, %v2632_v1  ;;  %v3366_v56 = vadd.f32 %v2721_v4, %v2720_v2  ;;  %v2635_v61 = vpop.f32.mrb[50].mxu0  ;;  %v2723_v9 = vpop.f32.mrb[50].mxu1 }
 0x1a2   :  { %v2636_v11 = vpop.f32.mrb[51].mxu0  ;;  %v2724_v13 = vpop.f32.mrb[51].mxu1 }
 0x1a3   :  { %v878_v18 = vadd.f32 %v2634_v6, %v3328_v33  ;;  %v2637_v14 = vadd.f32 %v2636_v11, %v2635_v61  ;;  %v3369_v15 = vadd.f32 %v2724_v13, %v2723_v9 }
 0x1a5   :  { %v881_v23 = vadd.f32 %v2637_v14, %v3332_v38 }
 0x1a7   :  { %v2416_v17 = vpack.c.bf16 %v881_v23, %v878_v18  ;;  %v2638_v19 = vpop.f32.mrb[52].mxu0  ;;  %v2726_v21 = vpop.f32.mrb[52].mxu1 }
 0x1a8   :  { %v2639_v22 = vpop.f32.mrb[53].mxu0  ;;  %v2727_v24 = vpop.f32.mrb[53].mxu1 }
 0x1a9   :  { %2524 = vst [vmem:[#allocation10 + $0x60] sm:$0xff] %v2416_v17   ;;  %v2640_v7 = vadd.f32 %v2639_v22, %v2638_v19  ;;  %v3372_v12 = vadd.f32 %v2727_v24, %v2726_v21  ;;  %v2641_v27 = vpop.f32.mrb[54].mxu0  ;;  %v2729_v28 = vpop.f32.mrb[54].mxu1 }
 0x1aa   :  { %v2642_v29 = vpop.f32.mrb[55].mxu0  ;;  %v2730_v30 = vpop.f32.mrb[55].mxu1 }
 0x1ab   :  { %v886_v33 = vadd.f32 %v3326_v31, %v2640_v7  ;;  %v2643_v32 = vadd.f32 %v2642_v29, %v2641_v27  ;;  %v3375_v34 = vadd.f32 %v2730_v30, %v2729_v28 }
 0x1ad   :  { %v889_v38 = vadd.f32 %v3330_v36, %v2643_v32 }
 0x1af   :  { %v2421_v37 = vpack.c.bf16 %v889_v38, %v886_v33  ;;  %v2644_v39 = vpop.f32.mrb[56].mxu0  ;;  %v2732_v40 = vpop.f32.mrb[56].mxu1 }
 0x1b0   :  { %v2645_v41 = vpop.f32.mrb[57].mxu0  ;;  %v2733_v5 = vpop.f32.mrb[57].mxu1 }
 0x1b1   :  { %2525 = vst [vmem:[#allocation10 + $0x68] sm:$0xff] %v2421_v37   ;;  %v2646_v42 = vadd.f32 %v2645_v41, %v2644_v39  ;;  %v3378_v10 = vadd.f32 %v2733_v5, %v2732_v40  ;;  %v2647_v45 = vpop.f32.mrb[58].mxu0  ;;  %v2735_v47 = vpop.f32.mrb[58].mxu1 }
 0x1b2   :  { %v2648_v48 = vpop.f32.mrb[59].mxu0  ;;  %v2736_v50 = vpop.f32.mrb[59].mxu1 }
 0x1b3   :  { %v894_v31 = vadd.f32 %v2646_v42, %v3336_v46  ;;  %v2649_v52 = vadd.f32 %v2648_v48, %v2647_v45  ;;  %v3381_v53 = vadd.f32 %v2736_v50, %v2735_v47 }
 0x1b5   :  { %v897_v36 = vadd.f32 %v2649_v52, %v3340_v51 }
 0x1b7   :  { %v2426_v55 = vpack.c.bf16 %v897_v36, %v894_v31  ;;  %v2650_v57 = vpop.f32.mrb[60].mxu0  ;;  %v2738_v58 = vpop.f32.mrb[60].mxu1 }
 0x1b8   :  { %v2651_v59 = vpop.f32.mrb[61].mxu0  ;;  %v2739_v20 = vpop.f32.mrb[61].mxu1 }
 0x1b9   :  { %2526 = vst [vmem:[#allocation10 + $0x70] sm:$0xff] %v2426_v55   ;;  %v2652_v60 = vadd.f32 %v2651_v59, %v2650_v57  ;;  %v3384_v25 = vadd.f32 %v2739_v20, %v2738_v58  ;;  %v2653_v0 = vpop.f32.mrb[62].mxu0  ;;  %v2741_v1 = vpop.f32.mrb[62].mxu1 }
 0x1ba   :  { %v2654_v2 = vpop.f32.mrb[63].mxu0  ;;  %v2742_v3 = vpop.f32.mrb[63].mxu1 }
 0x1bb   :  { %v902_v46 = vadd.f32 %v3334_v44, %v2652_v60  ;;  %v2655_v4 = vadd.f32 %v2654_v2, %v2653_v0  ;;  %v3387_v6 = vadd.f32 %v2742_v3, %v2741_v1 }
 0x1bd   :  { %v905_v51 = vadd.f32 %v3338_v49, %v2655_v4 }
 0x1bf   :  { %v2431_v61 = vpack.c.bf16 %v905_v51, %v902_v46  ;;  %v2744_v9 = vpop.f32.mrb[64].mxu1  ;;  %v2882_v11 = vpop.f32.mrb[64].mxu0 }
 0x1c0   :  { %v1784_v13 = vadd.f32 %v2882_v11, %v3348_v16  ;;  %v2745_v18 = vpop.f32.mrb[65].mxu1  ;;  %v1775_v14 = vpop.f32.mrb[65].mxu0 }
 0x1c1   :  { %2527 = vst [vmem:[#allocation10 + $0x78] sm:$0xff] %v2431_v61   ;;  %v3391_v23 = vadd.f32 %v2745_v18, %v2744_v9  ;;  %v1776_v17 = vadd.f32 %v3343_v63, %v1775_v14  ;;  %v2747_v19 = vpop.f32.mrb[66].mxu1  ;;  %v2883_v21 = vpop.f32.mrb[66].mxu0 }
 0x1c2   :  { %v1787_v44 = vadd.f32 %v2883_v21, %v3351_v26  ;;  %v2748_v22 = vpop.f32.mrb[67].mxu1  ;;  %v1778_v24 = vpop.f32.mrb[67].mxu0 }
 0x1c3   :  { %v3395_v7 = vadd.f32 %v2748_v22, %v2747_v19  ;;  %v1779_v49 = vadd.f32 %v3346_v8, %v1778_v24 }
 0x1c4   :  { %v2441_v27 = vpack.c.bf16 %v1787_v44, %v1784_v13 }
 0x1c5   :  { %v2436_v28 = vpack.c.bf16 %v1779_v49, %v1776_v17 }
 0x1c6   :  { %2529 = vst [vmem:[#allocation10 + $0x88] sm:$0xff] %v2441_v27  }
 0x1c7   :  { %2528 = vst [vmem:[#allocation10 + $0x80] sm:$0xff] %v2436_v28   ;;  %v2750_v16 = vpop.f32.mrb[68].mxu1  ;;  %v2886_v29 = vpop.f32.mrb[68].mxu0 }
 0x1c8   :  { %v1800_v30 = vadd.f32 %v2886_v29, %v3360_v54  ;;  %v2751_v33 = vpop.f32.mrb[69].mxu1  ;;  %v1791_v63 = vpop.f32.mrb[69].mxu0 }
 0x1c9   :  { %v2752_v32 = vadd.f32 %v2751_v33, %v2750_v16  ;;  %v1792_v38 = vadd.f32 %v3354_v35, %v1791_v63  ;;  %v2753_v26 = vpop.f32.mrb[70].mxu1  ;;  %v2887_v37 = vpop.f32.mrb[70].mxu0 }
 0x1ca   :  { %v1803_v39 = vadd.f32 %v2887_v37, %v3363_v62  ;;  %v2754_v40 = vpop.f32.mrb[71].mxu1  ;;  %v1794_v41 = vpop.f32.mrb[71].mxu0 }
 0x1cb   :  { %v2755_v8 = vadd.f32 %v2754_v40, %v2753_v26  ;;  %v1795_v5 = vadd.f32 %v3357_v43, %v1794_v41 }
 0x1cc   :  { %v2451_v42 = vpack.c.bf16 %v1803_v39, %v1800_v30 }
 0x1cd   :  { %v2446_v45 = vpack.c.bf16 %v1795_v5, %v1792_v38 }
 0x1ce   :  { %2531 = vst [vmem:[#allocation10 + $0x98] sm:$0xff] %v2451_v42  }
 0x1cf   :  { %2530 = vst [vmem:[#allocation10 + $0x90] sm:$0xff] %v2446_v45   ;;  %v2756_v47 = vpop.f32.mrb[72].mxu1  ;;  %v2890_v54 = vpop.f32.mrb[72].mxu0 }
 0x1d0   :  { %v1816_v48 = vadd.f32 %v2890_v54, %v3372_v12  ;;  %v2757_v50 = vpop.f32.mrb[73].mxu1  ;;  %v1807_v31 = vpop.f32.mrb[73].mxu0 }
 0x1d1   :  { %v2758_v35 = vadd.f32 %v2757_v50, %v2756_v47  ;;  %v1808_v52 = vadd.f32 %v3366_v56, %v1807_v31  ;;  %v2759_v36 = vpop.f32.mrb[74].mxu1  ;;  %v2891_v62 = vpop.f32.mrb[74].mxu0 }
 0x1d2   :  { %v1819_v55 = vadd.f32 %v2891_v62, %v3375_v34  ;;  %v2760_v57 = vpop.f32.mrb[75].mxu1  ;;  %v1810_v58 = vpop.f32.mrb[75].mxu0 }
 0x1d3   :  { %v2761_v43 = vadd.f32 %v2760_v57, %v2759_v36  ;;  %v1811_v59 = vadd.f32 %v3369_v15, %v1810_v58 }
 0x1d4   :  { %v2461_v20 = vpack.c.bf16 %v1819_v55, %v1816_v48 }
 0x1d5   :  { %v2456_v60 = vpack.c.bf16 %v1811_v59, %v1808_v52 }
 0x1d6   :  { %2533 = vst [vmem:[#allocation10 + $0xa8] sm:$0xff] %v2461_v20  }
 0x1d7   :  { %2532 = vst [vmem:[#allocation10 + $0xa0] sm:$0xff] %v2456_v60   ;;  %v2762_v0 = vpop.f32.mrb[76].mxu1  ;;  %v2894_v12 = vpop.f32.mrb[76].mxu0 }
 0x1d8   :  { %v1832_v1 = vadd.f32 %v2894_v12, %v3384_v25  ;;  %v2763_v2 = vpop.f32.mrb[77].mxu1  ;;  %v1823_v3 = vpop.f32.mrb[77].mxu0 }
 0x1d9   :  { %v2764_v56 = vadd.f32 %v2763_v2, %v2762_v0  ;;  %v1824_v46 = vadd.f32 %v3378_v10, %v1823_v3  ;;  %v2765_v4 = vpop.f32.mrb[78].mxu1  ;;  %v2895_v34 = vpop.f32.mrb[78].mxu0 }
 0x1da   :  { %v1835_v51 = vadd.f32 %v2895_v34, %v3387_v6  ;;  %v2766_v61 = vpop.f32.mrb[79].mxu1  ;;  %v1826_v9 = vpop.f32.mrb[79].mxu0 }
 0x1db   :  { %v2767_v15 = vadd.f32 %v2766_v61, %v2765_v4  ;;  %v1827_v11 = vadd.f32 %v3381_v53, %v1826_v9 }
 0x1dc   :  { %v2471_v13 = vpack.c.bf16 %v1835_v51, %v1832_v1 }
 0x1dd   :  { %v2466_v18 = vpack.c.bf16 %v1827_v11, %v1824_v46 }
 0x1de   :  { %2535 = vst [vmem:[#allocation10 + $0xb8] sm:$0xff] %v2471_v13  }
 0x1df   :  { %2534 = vst [vmem:[#allocation10 + $0xb0] sm:$0xff] %v2466_v18   ;;  %v2768_v14 = vpop.f32.mrb[80].mxu1  ;;  %v2898_v25 = vpop.f32.mrb[80].mxu0 }
 0x1e0   :  { %v1848_v17 = vadd.f32 %v2898_v25, %v2752_v32  ;;  %v2769_v19 = vpop.f32.mrb[81].mxu1  ;;  %v1839_v21 = vpop.f32.mrb[81].mxu0 }
 0x1e1   :  { %v2770_v44 = vadd.f32 %v2769_v19, %v2768_v14  ;;  %v1840_v10 = vadd.f32 %v3391_v23, %v1839_v21  ;;  %v2771_v22 = vpop.f32.mrb[82].mxu1  ;;  %v2899_v24 = vpop.f32.mrb[82].mxu0 }
 0x1e2   :  { %v1851_v6 = vadd.f32 %v2899_v24, %v2755_v8  ;;  %v2772_v49 = vpop.f32.mrb[83].mxu1  ;;  %v1842_v27 = vpop.f32.mrb[83].mxu0 }
 0x1e3   :  { %v2773_v28 = vadd.f32 %v2772_v49, %v2771_v22  ;;  %v1843_v53 = vadd.f32 %v3395_v7, %v1842_v27 }
 0x1e4   :  { %v2481_v16 = vpack.c.bf16 %v1851_v6, %v1848_v17 }
 0x1e5   :  { %v2476_v29 = vpack.c.bf16 %v1843_v53, %v1840_v10 }
 0x1e6   :  { %2537 = vst [vmem:[#allocation10 + $0xc8] sm:$0xff] %v2481_v16  }
 0x1e7   :  { %2536 = vst [vmem:[#allocation10 + $0xc0] sm:$0xff] %v2476_v29   ;;  %v2774_v30 = vpop.f32.mrb[84].mxu1  ;;  %v2902_v33 = vpop.f32.mrb[84].mxu0 }
 0x1e8   :  { %v1864_v63 = vadd.f32 %v2902_v33, %v2764_v56  ;;  %v2775_v32 = vpop.f32.mrb[85].mxu1  ;;  %v1855_v38 = vpop.f32.mrb[85].mxu0 }
 0x1e9   :  { %v2776_v26 = vadd.f32 %v2775_v32, %v2774_v30  ;;  %v1856_v37 = vadd.f32 %v2758_v35, %v1855_v38  ;;  %v2777_v23 = vpop.f32.mrb[86].mxu1  ;;  %v2903_v39 = vpop.f32.mrb[86].mxu0 }
 0x1ea   :  { %v1867_v40 = vadd.f32 %v2903_v39, %v2767_v15  ;;  %v2778_v41 = vpop.f32.mrb[87].mxu1  ;;  %v1858_v8 = vpop.f32.mrb[87].mxu0 }
 0x1eb   :  { %v2779_v5 = vadd.f32 %v2778_v41, %v2777_v23  ;;  %v1859_v42 = vadd.f32 %v2761_v43, %v1858_v8 }
 0x1ec   :  { %v2491_v45 = vpack.c.bf16 %v1867_v40, %v1864_v63 }
 0x1ed   :  { %v2486_v7 = vpack.c.bf16 %v1859_v42, %v1856_v37 }
 0x1ee   :  { %2539 = vst [vmem:[#allocation10 + $0xd8] sm:$0xff] %v2491_v45  }
 0x1ef   :  { %2538 = vst [vmem:[#allocation10 + $0xd0] sm:$0xff] %v2486_v7   ;;  %v2780_v47 = vpop.f32.mrb[88].mxu1  ;;  %v2906_v54 = vpop.f32.mrb[88].mxu0 }
 0x1f0   :  { %v1880_v48 = vadd.f32 %v2906_v54, %v2776_v26  ;;  %v2781_v50 = vpop.f32.mrb[89].mxu1  ;;  %v1871_v31 = vpop.f32.mrb[89].mxu0 }
 0x1f1   :  { %v2782_v52 = vadd.f32 %v2781_v50, %v2780_v47  ;;  %v1872_v36 = vadd.f32 %v2770_v44, %v1871_v31  ;;  %v2783_v62 = vpop.f32.mrb[90].mxu1  ;;  %v2907_v35 = vpop.f32.mrb[90].mxu0 }
 0x1f2   :  { %v1883_v55 = vadd.f32 %v2907_v35, %v2779_v5  ;;  %v2784_v57 = vpop.f32.mrb[91].mxu1  ;;  %v1874_v58 = vpop.f32.mrb[91].mxu0 }
 0x1f3   :  { %v2785_v59 = vadd.f32 %v2784_v57, %v2783_v62  ;;  %v1875_v20 = vadd.f32 %v2773_v28, %v1874_v58 }
 0x1f4   :  { %v2501_v60 = vpack.c.bf16 %v1883_v55, %v1880_v48 }
 0x1f5   :  { %v2496_v43 = vpack.c.bf16 %v1875_v20, %v1872_v36 }
 0x1f6   :  { %2541 = vst [vmem:[#allocation10 + $0xe8] sm:$0xff] %v2501_v60  }
 0x1f7   :  { %2540 = vst [vmem:[#allocation10 + $0xe0] sm:$0xff] %v2496_v43   ;;  %v2786_v0 = vpop.f32.mrb[92].mxu1  ;;  %v2910_v12 = vpop.f32.mrb[92].mxu0 }
 0x1f8   :  { %v2787_v1 = vpop.f32.mrb[93].mxu1  ;;  %v1887_v2 = vpop.f32.mrb[93].mxu0 }
 0x1f9   :  { %v2788_v3 = vadd.f32 %v2787_v1, %v2786_v0  ;;  %v1888_v56 = vadd.f32 %v2782_v52, %v1887_v2  ;;  %v2789_v46 = vpop.f32.mrb[94].mxu1  ;;  %v2911_v4 = vpop.f32.mrb[94].mxu0 }
 0x1fa   :  { %v2790_v34 = vpop.f32.mrb[95].mxu1  ;;  %v1890_v51 = vpop.f32.mrb[95].mxu0 }
 0x1fb   :  { %v1896_v61 = vadd.f32 %v2910_v12, %v2788_v3  ;;  %v2791_v9 = vadd.f32 %v2790_v34, %v2789_v46  ;;  %v1891_v15 = vadd.f32 %v2785_v59, %v1890_v51 }
 0x1fd   :  { %v1899_v11 = vadd.f32 %v2911_v4, %v2791_v9  ;;  %v2506_v13 = vpack.c.bf16 %v1891_v15, %v1888_v56 }
 0x1ff   :  { %v2511_v18 = vpack.c.bf16 %v1899_v11, %v1896_v61  ;;  %2542 = vst [vmem:[#allocation10 + $0xf0] sm:$0xff] %v2506_v13  }
 0x201   :  { %2543 = vst [vmem:[#allocation10 + $0xf8] sm:$0xff] %v2511_v18  }
 0x202   :  { %3196 = shalt.err (!%p3193_p8)
}
 0x203   :  { %s3197_s15 = scalar_lea.hbm %s3431_s4, 4096 }
 0x204   :  { %p3198_p9 = scmp.ne.s32.totalorder %s3431_s4, %s3197_s15  ;;  %p3201_p10 = scmp.lt.u32.totalorder %s3197_s15, %s3431_s4 }
 0x206   :  { %p3203_p11 = pnand %p3201_p10, %p3198_p9 }
 0x208   :  { %3206 = shalt.err (!%p3203_p11)
}
 0x209   :  { %2073 = dma.vmem_to_hbm [thread:$0]  %s2068_s12, 4096, %s3431_s4, [#allocation4], %s3220_s0, %s3220_s0, %s3221_s18  }
 0x20a   :  { %3213 = dma.done.wait [#allocation4], 4096  }
 0x20b   :  { %3214 = vsyncadd [#allocation4], 4294963200 }
 0x20c   :  { %2077 = vsyncpa [#allocation3], 1 }
 0x20d   :  { %2078 = vsyncpa [#allocation6], 1 }
 0x20e   :  { %2079 = vsyncpa [#allocation9], 1 }
 0x20f   :  { %2080 = vsyncpa [#allocation4], 1 }

</bundles_post_ra>
